<compile_context>
chip_gen: v7x
topology: tpu7x:2x2x1
jax: 0.10.0
libtpu: 0.0.40
codegen_flags: <defaults>
</compile_context>

<pallas_src>
import jax
import jax.numpy as jnp
import numpy as np
from jax.experimental import pallas as pl
from jax.experimental.pallas import tpu as pltpu


# --------------------------------------------------------------------------
# Kernel: one (tile_t, D) slab of tokens.
# --------------------------------------------------------------------------
def _anyvariate_kernel(x_ref, gamma_ref, beta_ref, w_ref, b_ref, o_ref):
    x = x_ref[...].astype(jnp.float32)                       # (tile_t, D)

    # LayerNorm over the feature dim (biased variance, eps = 1e-5).
    mu = jnp.mean(x, axis=-1, keepdims=True)
    xc = x - mu
    var = jnp.mean(xc * xc, axis=-1, keepdims=True)
    xn = xc * jax.lax.rsqrt(var + 1e-5) * gamma_ref[...] + beta_ref[...]

    # N == 1 variate -> attention output == V; W_V and the output projection
    # are pre-folded into a single weight, so one MXU matmul remains.
    w = w_ref[...]
    proj = jnp.dot(xn.astype(w.dtype), w, preferred_element_type=jnp.float32)

    # Output projection bias + residual (residual is the layer-normed x).
    o_ref[...] = (proj + b_ref[...] + xn).astype(o_ref.dtype)


# --------------------------------------------------------------------------
# Wrapper
# --------------------------------------------------------------------------
def _round_up(n, m):
    return ((n + m - 1) // m) * m


def _physical_vmem_bytes():
    """Per-core VMEM capacity; conservative 64 MiB (v7x) fallback."""
    try:
        info = pltpu.get_tpu_info()
        for name in ("vmem_capacity_bytes", "vmem_bytes", "vmem_size_bytes"):
            v = getattr(info, name, None)
            if v:
                return int(v)
    except Exception:
        pass
    return 64 << 20


def anyvariate_attention(x, params, *, tile_t=512, compute_dtype=jnp.float32,
                         out_dtype=None):
    """AnyVariateAttention forward.  x: (B, T, D) float32 -> (B, T, D)."""
    B, T, D = x.shape
    n_tok = B * T
    out_dtype = x.dtype if out_dtype is None else out_dtype

    # ---- Fold W_V and the output projection (affine for N == 1), in f32 ----
    wv = params["wv"].astype(jnp.float32)
    wo = params["wo"].astype(jnp.float32)
    w_comb = wv @ wo                                              # (D, D)
    b_comb = params["bv"].astype(jnp.float32) @ wo \
        + params["bo"].astype(jnp.float32)                        # (1, D)
    gamma = params["gamma"].astype(jnp.float32)                   # (1, D)
    beta = params["beta"].astype(jnp.float32)                     # (1, D)
    if compute_dtype != jnp.float32:
        # Cast weights once here; the kernel only casts the activation.
        w_comb = w_comb.astype(compute_dtype)
    # wq/bq/wk/bk/R/u1/u2 are never loaded: dead for N == 1.

    # ---- Token axis: flat, unpadded; ragged last block handled by the grid.
    x2d = x.reshape(n_tok, D)                 # contiguous view, no copy
    tile_t = int(max(8, min(tile_t, _round_up(n_tok, 8))))
    grid = (pl.cdiv(n_tok, tile_t),)

    # ---- VMEM budget: pipeline buffers + weights + in-kernel temporaries,
    # capped below physical VMEM with headroom (generation-aware).
    d_vreg = _round_up(D, 128)
    t_vreg = _round_up(tile_t, 8)
    w_bytes = jnp.dtype(compute_dtype).itemsize
    vmem_need = (2 * 2 * 4 * t_vreg * d_vreg       # x + out tiles, 2 buffers
                 + 2 * w_bytes * d_vreg * d_vreg   # combined weight
                 + 6 * 4 * t_vreg * d_vreg         # live f32 temporaries
                 + 3 * 4 * 8 * d_vreg)             # gamma/beta/bias
    vmem_limit = max(vmem_need + (8 << 20), 32 << 20)
    vmem_limit = int(min(vmem_limit, _physical_vmem_bytes() - (12 << 20)))

    def run(single_buffer_weights):
        def w_spec(a):
            idx = lambda i, nd=a.ndim: (0,) * nd
            if single_buffer_weights and hasattr(pl, "Buffered"):
                # Grid-invariant blocks: no need to double-buffer them.
                return pl.BlockSpec(a.shape, idx, pipeline_mode=pl.Buffered(1))
            return pl.BlockSpec(a.shape, idx)

        return pl.pallas_call(
            _anyvariate_kernel,
            out_shape=jax.ShapeDtypeStruct((n_tok, D), out_dtype),
            grid_spec=pltpu.PrefetchScalarGridSpec(
                num_scalar_prefetch=0,
                grid=grid,
                in_specs=[
                    pl.BlockSpec((tile_t, D), lambda i: (i, 0)),   # x
                    w_spec(gamma), w_spec(beta),
                    w_spec(w_comb), w_spec(b_comb),
                ],
                out_specs=pl.BlockSpec((tile_t, D), lambda i: (i, 0)),
            ),
            compiler_params=pltpu.CompilerParams(
                dimension_semantics=("parallel",),    # megacore / 2-TC sharding
                vmem_limit_bytes=vmem_limit,
            ),
        )(x2d, gamma, beta, w_comb, b_comb)

    try:
        out = run(True)
    except Exception:
        # Fallback if this jax build rejects pipeline_mode=Buffered(1).
        out = run(False)

    return out.reshape(B, T, D)


# --------------------------------------------------------------------------
# Pure-JAX reference (mirrors the full PyTorch forward, incl. dead Q/K path).
# --------------------------------------------------------------------------
def ref_forward(x, p):
    B, T, D = x.shape
    mu = x.mean(-1, keepdims=True)
    var = ((x - mu) ** 2).mean(-1, keepdims=True)
    xn = (x - mu) / jnp.sqrt(var + 1e-5) * p["gamma"][0] + p["beta"][0]
    x4 = xn.reshape(B, T, 1, D)
    Q = x4 @ p["wq"] + p["bq"][0]
    K = (x4 @ p["wk"] + p["bk"][0]) @ p["R"]
    V = x4 @ p["wv"] + p["bv"][0]
    scale = jnp.sqrt(jnp.float32(2 * D))
    scores = jnp.einsum("btnd,btmd->btnm", Q, K) / scale
    eye = jnp.eye(1, dtype=jnp.float32)
    scores = scores + (p["u1"][0, 0] * eye + p["u2"][0, 0] * (1.0 - eye))
    w = jax.nn.softmax(scores, axis=-1)
    out = (w @ V).reshape(B, T, D)
    return out @ p["wo"] + p["bo"][0] + xn


def init_params(key, d_model):
    ks = jax.random.split(key, 10)
    D = d_model
    s = 1.0 / np.sqrt(D)
    return {
        "wq": jax.random.uniform(ks[0], (D, 2 * D), jnp.float32, -s, s),
        "bq": jax.random.uniform(ks[1], (1, 2 * D), jnp.float32, -s, s),
        "wk": jax.random.uniform(ks[2], (D, 2 * D), jnp.float32, -s, s),
        "bk": jax.random.uniform(ks[3], (1, 2 * D), jnp.float32, -s, s),
        "wv": jax.random.uniform(ks[4], (D, D), jnp.float32, -s, s),
        "bv": jax.random.uniform(ks[5], (1, D), jnp.float32, -s, s),
        "R": jax.random.normal(ks[6], (2 * D, 2 * D), jnp.float32),
        "u1": jax.random.normal(ks[7], (1, 1), jnp.float32) * 0.02,
        "u2": jax.random.normal(ks[8], (1, 1), jnp.float32) * 0.02,
        "gamma": jnp.ones((1, D), jnp.float32),
        "beta": jnp.zeros((1, D), jnp.float32),
        "wo": jax.random.uniform(ks[9], (D, D), jnp.float32, -s, s),
        "bo": jnp.zeros((1, D), jnp.float32),
    }


if __name__ == "__main__":
    B, T, D = 2, 16, 32
    key = jax.random.PRNGKey(0)
    kx, kp = jax.random.split(key)
    x = jax.random.normal(kx, (B, T, D), jnp.float32)
    params = init_params(kp, D)

    # Default f32 path keeps 1e-4 fidelity.  Pass compute_dtype=jnp.bfloat16
    # (and loosen the tolerance) for ~2x MXU throughput / half the weight DMA.
    out = anyvariate_attention(x, params)
    out = jax.block_until_ready(out)

    ref = ref_forward(x, params)
    np.testing.assert_allclose(np.asarray(out), np.asarray(ref),
                               rtol=1e-4, atol=1e-4)
    print("KERNEL_OK")
</pallas_src>

<mosaic_0001>
module attributes {stable_mosaic.version = 11 : i64} {
  func.func @_anyvariate_kernel(%arg0: i32, %arg1: memref<32x32xf32, #tpu.memory_space<vmem>>, %arg2: memref<1x32xf32, #tpu.memory_space<vmem>>, %arg3: memref<1x32xf32, #tpu.memory_space<vmem>>, %arg4: memref<32x32xf32, #tpu.memory_space<vmem>>, %arg5: memref<1x32xf32, #tpu.memory_space<vmem>>, %arg6: memref<32x32xf32, #tpu.memory_space<vmem>>) attributes {dimension_semantics = [#tpu.dimension_semantics<parallel>], iteration_bounds = array<i64: 1>, scalar_prefetch = 0 : i64, scratch_operands = 0 : i64, tpu.core_type = #tpu.core_type<tc>, window_params = [{transform_indices = @transform_0, window_bounds = array<i64: 32, 32>}, {pipeline_mode = #tpu.pipeline_mode<synchronous>, transform_indices = @transform_1, window_bounds = array<i64: 1, 32>}, {pipeline_mode = #tpu.pipeline_mode<synchronous>, transform_indices = @transform_2, window_bounds = array<i64: 1, 32>}, {pipeline_mode = #tpu.pipeline_mode<synchronous>, transform_indices = @transform_3, window_bounds = array<i64: 32, 32>}, {pipeline_mode = #tpu.pipeline_mode<synchronous>, transform_indices = @transform_4, window_bounds = array<i64: 1, 32>}, {transform_indices = @transform_5, window_bounds = array<i64: 32, 32>}]} {
    %c0 = arith.constant 0 : index
    %c0_0 = arith.constant 0 : index
    %0 = vector.load %arg1[%c0, %c0_0] : memref<32x32xf32, #tpu.memory_space<vmem>>, vector<32x32xf32>
    %cst = arith.constant dense<0.000000e+00> : vector<32xf32>
    %1 = vector.multi_reduction <add>, %0, %cst [1] : vector<32x32xf32> to vector<32xf32>
    %2 = vector.shape_cast %1 : vector<32xf32> to vector<32x1xf32>
    %cst_1 = arith.constant 3.200000e+01 : f32
    %3 = vector.broadcast %cst_1 : f32 to vector<32x1xf32>
    %4 = arith.divf %2, %3 : vector<32x1xf32>
    %5 = vector.broadcast %4 : vector<32x1xf32> to vector<32x32xf32>
    %6 = arith.subf %0, %5 : vector<32x32xf32>
    %7 = arith.mulf %6, %6 : vector<32x32xf32>
    %cst_2 = arith.constant dense<0.000000e+00> : vector<32xf32>
    %8 = vector.multi_reduction <add>, %7, %cst_2 [1] : vector<32x32xf32> to vector<32xf32>
    %9 = vector.shape_cast %8 : vector<32xf32> to vector<32x1xf32>
    %cst_3 = arith.constant 3.200000e+01 : f32
    %10 = vector.broadcast %cst_3 : f32 to vector<32x1xf32>
    %11 = arith.divf %9, %10 : vector<32x1xf32>
    %cst_4 = arith.constant 9.99999974E-6 : f32
    %12 = vector.broadcast %cst_4 : f32 to vector<32x1xf32>
    %13 = arith.addf %11, %12 : vector<32x1xf32>
    %14 = math.rsqrt %13 : vector<32x1xf32>
    %15 = vector.broadcast %14 : vector<32x1xf32> to vector<32x32xf32>
    %16 = arith.mulf %6, %15 : vector<32x32xf32>
    %c0_5 = arith.constant 0 : index
    %c0_6 = arith.constant 0 : index
    %17 = vector.load %arg2[%c0_5, %c0_6] : memref<1x32xf32, #tpu.memory_space<vmem>>, vector<1x32xf32>
    %18 = vector.broadcast %17 : vector<1x32xf32> to vector<32x32xf32>
    %19 = arith.mulf %16, %18 : vector<32x32xf32>
    %c0_7 = arith.constant 0 : index
    %c0_8 = arith.constant 0 : index
    %20 = vector.load %arg3[%c0_7, %c0_8] : memref<1x32xf32, #tpu.memory_space<vmem>>, vector<1x32xf32>
    %21 = vector.broadcast %20 : vector<1x32xf32> to vector<32x32xf32>
    %22 = arith.addf %19, %21 : vector<32x32xf32>
    %c0_9 = arith.constant 0 : index
    %c0_10 = arith.constant 0 : index
    %23 = vector.load %arg4[%c0_9, %c0_10] : memref<32x32xf32, #tpu.memory_space<vmem>>, vector<32x32xf32>
    %cst_11 = arith.constant dense<0.000000e+00> : vector<32x32xf32>
    %24 = tpu.matmul %22, %23, %cst_11 {dimension_numbers = #tpu.dot_dimension_numbers<[1], [0], [0], [1], [0, 0, 1, 1], [], []>} : vector<32x32xf32>, vector<32x32xf32>, vector<32x32xf32> -> vector<32x32xf32>
    %c0_12 = arith.constant 0 : index
    %c0_13 = arith.constant 0 : index
    %25 = vector.load %arg5[%c0_12, %c0_13] : memref<1x32xf32, #tpu.memory_space<vmem>>, vector<1x32xf32>
    %26 = vector.broadcast %25 : vector<1x32xf32> to vector<32x32xf32>
    %27 = arith.addf %24, %26 : vector<32x32xf32>
    %28 = arith.addf %27, %22 : vector<32x32xf32>
    %c0_14 = arith.constant 0 : index
    %c0_15 = arith.constant 0 : index
    %29 = vector.load %arg6[%c0_14, %c0_15] : memref<32x32xf32, #tpu.memory_space<vmem>>, vector<32x32xf32>
    tpu.vector_store %arg6[%c0_14, %c0_15], %28 {strides = array<i32>} : memref<32x32xf32, #tpu.memory_space<vmem>>, vector<32x32xf32>,
    return
  }
  func.func @transform_0(%arg0: i32) -> (i32, i32) {
    %c0_i32 = arith.constant 0 : i32
    %c0_i32_0 = arith.constant 0 : i32
    return %arg0, %c0_i32 : i32, i32
  }
  func.func @transform_1(%arg0: i32) -> (i32, i32) {
    %c0_i32 = arith.constant 0 : i32
    %c0_i32_0 = arith.constant 0 : i32
    %c0_i32_1 = arith.constant 0 : i32
    return %c0_i32, %c0_i32_0 : i32, i32
  }
  func.func @transform_2(%arg0: i32) -> (i32, i32) {
    %c0_i32 = arith.constant 0 : i32
    %c0_i32_0 = arith.constant 0 : i32
    %c0_i32_1 = arith.constant 0 : i32
    return %c0_i32, %c0_i32_0 : i32, i32
  }
  func.func @transform_3(%arg0: i32) -> (i32, i32) {
    %c0_i32 = arith.constant 0 : i32
    %c0_i32_0 = arith.constant 0 : i32
    %c0_i32_1 = arith.constant 0 : i32
    return %c0_i32, %c0_i32_0 : i32, i32
  }
  func.func @transform_4(%arg0: i32) -> (i32, i32) {
    %c0_i32 = arith.constant 0 : i32
    %c0_i32_0 = arith.constant 0 : i32
    %c0_i32_1 = arith.constant 0 : i32
    return %c0_i32, %c0_i32_0 : i32, i32
  }
  func.func @transform_5(%arg0: i32) -> (i32, i32) {
    %c0_i32 = arith.constant 0 : i32
    %c0_i32_0 = arith.constant 0 : i32
    return %arg0, %c0_i32 : i32, i32
  }
}

module attributes {stable_mosaic.version = 11 : i64} {
  func.func @_anyvariate_kernel(%arg0: i32, %arg1: memref<32x32xf32, #tpu.memory_space<vmem>>, %arg2: memref<1x32xf32, #tpu.memory_space<vmem>>, %arg3: memref<1x32xf32, #tpu.memory_space<vmem>>, %arg4: memref<32x32xf32, #tpu.memory_space<vmem>>, %arg5: memref<1x32xf32, #tpu.memory_space<vmem>>, %arg6: memref<32x32xf32, #tpu.memory_space<vmem>>) attributes {dimension_semantics = [#tpu.dimension_semantics<parallel>], iteration_bounds = array<i64: 1>, scalar_prefetch = 0 : i64, scratch_operands = 0 : i64, tpu.core_type = #tpu.core_type<tc>, window_params = [{transform_indices = @transform_0, window_bounds = array<i64: 32, 32>}, {pipeline_mode = #tpu.pipeline_mode<synchronous>, transform_indices = @transform_1, window_bounds = array<i64: 1, 32>}, {pipeline_mode = #tpu.pipeline_mode<synchronous>, transform_indices = @transform_2, window_bounds = array<i64: 1, 32>}, {pipeline_mode = #tpu.pipeline_mode<synchronous>, transform_indices = @transform_3, window_bounds = array<i64: 32, 32>}, {pipeline_mode = #tpu.pipeline_mode<synchronous>, transform_indices = @transform_4, window_bounds = array<i64: 1, 32>}, {transform_indices = @transform_5, window_bounds = array<i64: 32, 32>}]} {
    %c0 = arith.constant 0 : index
    %c0_0 = arith.constant 0 : index
    %0 = vector.load %arg1[%c0, %c0_0] : memref<32x32xf32, #tpu.memory_space<vmem>>, vector<32x32xf32>
    %cst = arith.constant dense<0.000000e+00> : vector<32xf32>
    %1 = vector.multi_reduction <add>, %0, %cst [1] : vector<32x32xf32> to vector<32xf32>
    %2 = vector.shape_cast %1 : vector<32xf32> to vector<32x1xf32>
    %cst_1 = arith.constant 3.200000e+01 : f32
    %3 = vector.broadcast %cst_1 : f32 to vector<32x1xf32>
    %4 = arith.divf %2, %3 : vector<32x1xf32>
    %5 = vector.broadcast %4 : vector<32x1xf32> to vector<32x32xf32>
    %6 = arith.subf %0, %5 : vector<32x32xf32>
    %7 = arith.mulf %6, %6 : vector<32x32xf32>
    %cst_2 = arith.constant dense<0.000000e+00> : vector<32xf32>
    %8 = vector.multi_reduction <add>, %7, %cst_2 [1] : vector<32x32xf32> to vector<32xf32>
    %9 = vector.shape_cast %8 : vector<32xf32> to vector<32x1xf32>
    %cst_3 = arith.constant 3.200000e+01 : f32
    %10 = vector.broadcast %cst_3 : f32 to vector<32x1xf32>
    %11 = arith.divf %9, %10 : vector<32x1xf32>
    %cst_4 = arith.constant 9.99999974E-6 : f32
    %12 = vector.broadcast %cst_4 : f32 to vector<32x1xf32>
    %13 = arith.addf %11, %12 : vector<32x1xf32>
    %14 = math.rsqrt %13 : vector<32x1xf32>
    %15 = vector.broadcast %14 : vector<32x1xf32> to vector<32x32xf32>
    %16 = arith.mulf %6, %15 : vector<32x32xf32>
    %c0_5 = arith.constant 0 : index
    %c0_6 = arith.constant 0 : index
    %17 = vector.load %arg2[%c0_5, %c0_6] : memref<1x32xf32, #tpu.memory_space<vmem>>, vector<1x32xf32>
    %18 = vector.broadcast %17 : vector<1x32xf32> to vector<32x32xf32>
    %19 = arith.mulf %16, %18 : vector<32x32xf32>
    %c0_7 = arith.constant 0 : index
    %c0_8 = arith.constant 0 : index
    %20 = vector.load %arg3[%c0_7, %c0_8] : memref<1x32xf32, #tpu.memory_space<vmem>>, vector<1x32xf32>
    %21 = vector.broadcast %20 : vector<1x32xf32> to vector<32x32xf32>
    %22 = arith.addf %19, %21 : vector<32x32xf32>
    %c0_9 = arith.constant 0 : index
    %c0_10 = arith.constant 0 : index
    %23 = vector.load %arg4[%c0_9, %c0_10] : memref<32x32xf32, #tpu.memory_space<vmem>>, vector<32x32xf32>
    %cst_11 = arith.constant dense<0.000000e+00> : vector<32x32xf32>
    %24 = tpu.matmul %22, %23, %cst_11 {dimension_numbers = #tpu.dot_dimension_numbers<[1], [0], [0], [1], [0, 0, 1, 1], [], []>} : vector<32x32xf32>, vector<32x32xf32>, vector<32x32xf32> -> vector<32x32xf32>
    %c0_12 = arith.constant 0 : index
    %c0_13 = arith.constant 0 : index
    %25 = vector.load %arg5[%c0_12, %c0_13] : memref<1x32xf32, #tpu.memory_space<vmem>>, vector<1x32xf32>
    %26 = vector.broadcast %25 : vector<1x32xf32> to vector<32x32xf32>
    %27 = arith.addf %24, %26 : vector<32x32xf32>
    %28 = arith.addf %27, %22 : vector<32x32xf32>
    %c0_14 = arith.constant 0 : index
    %c0_15 = arith.constant 0 : index
    %29 = vector.load %arg6[%c0_14, %c0_15] : memref<32x32xf32, #tpu.memory_space<vmem>>, vector<32x32xf32>
    tpu.vector_store %arg6[%c0_14, %c0_15], %28 {strides = array<i32>} : memref<32x32xf32, #tpu.memory_space<vmem>>, vector<32x32xf32>,
    return
  }
  func.func @transform_0(%arg0: i32) -> (i32, i32) {
    %c0_i32 = arith.constant 0 : i32
    %c0_i32_0 = arith.constant 0 : i32
    return %arg0, %c0_i32 : i32, i32
  }
  func.func @transform_1(%arg0: i32) -> (i32, i32) {
    %c0_i32 = arith.constant 0 : i32
    %c0_i32_0 = arith.constant 0 : i32
    %c0_i32_1 = arith.constant 0 : i32
    return %c0_i32, %c0_i32_0 : i32, i32
  }
  func.func @transform_2(%arg0: i32) -> (i32, i32) {
    %c0_i32 = arith.constant 0 : i32
    %c0_i32_0 = arith.constant 0 : i32
    %c0_i32_1 = arith.constant 0 : i32
    return %c0_i32, %c0_i32_0 : i32, i32
  }
  func.func @transform_3(%arg0: i32) -> (i32, i32) {
    %c0_i32 = arith.constant 0 : i32
    %c0_i32_0 = arith.constant 0 : i32
    %c0_i32_1 = arith.constant 0 : i32
    return %c0_i32, %c0_i32_0 : i32, i32
  }
  func.func @transform_4(%arg0: i32) -> (i32, i32) {
    %c0_i32 = arith.constant 0 : i32
    %c0_i32_0 = arith.constant 0 : i32
    %c0_i32_1 = arith.constant 0 : i32
    return %c0_i32, %c0_i32_0 : i32, i32
  }
  func.func @transform_5(%arg0: i32) -> (i32, i32) {
    %c0_i32 = arith.constant 0 : i32
    %c0_i32_0 = arith.constant 0 : i32
    return %arg0, %c0_i32 : i32, i32
  }
}

</mosaic_0001>

<bundles_post_ra>
// kernel: tpu_custom_call.1
= control target key start
LH: loop header
LB: loop body
LE: loop exit
PB: predicated region body
PF: predicated region fallthrough
CT: control target
= control target key end

     0   :  { %10 = vsyncpa [#allocation3], 0  ;;  %s494_s0 = inlined_call_operand.hbm [shape: f32[32,32], index: 0, kind: input, shape index: {}]   ;;  %s495_s1 = inlined_call_operand.vmem [shape: f32[1,32], index: 1, kind: input, shape index: {}]   ;;  %s496_s2 = inlined_call_operand.vmem [shape: f32[1,32], index: 2, kind: input, shape index: {}]   ;;  %s497_s3 = inlined_call_operand.hbm [shape: f32[32,32], index: 3, kind: input, shape index: {}]   ;;  %s498_s4 = inlined_call_operand.vmem [shape: f32[1,32], index: 4, kind: input, shape index: {}]   ;;  %s499_s5 = inlined_call_operand.hbm [shape: f32[32,32], index: 5, kind: output, shape index: {}]  }
   0x1   :  { %11 = vsyncpa [#allocation6], 0 }
   0x2   :  { %12 = vsyncpa [#allocation4], 0  ;;  %s389_s18 = smov [#allocation2]   ;;  %s317_s22 = scalar_lea.hbm %s494_s0, 512 }
   0x3   :  { %s18_s19 = sshll.u32 %s389_s18, 4  ;;  %p318_p0 = scmp.ne.s32.totalorder %s494_s0, %s317_s22  ;;  %s19_s19 = int_to_ptr.vmem [resolvable:$true] %s18_s19 }
   0x4   :  { %p321_p1 = scmp.lt.u32.totalorder %s317_s22, %s494_s0 }
   0x6   :  { %p323_p2 = pnand %p321_p1, %p318_p0 }
   0x8   :  { %326 = shalt.err (!%p323_p2)
}
   0x9   :  { %s327_s27 = scalar_lea.vmem %s19_s19, 512  ;;  %p332_p4 = scmp.lt.s32.totalorder %s19_s19, %s19_s19 }
   0xa   :  { %p328_p3 = scmp.ne.s32.totalorder %s19_s19, %s327_s27  ;;  %p333_p5 = scmp.lt.s32.totalorder %s327_s27, %s327_s27 }
   0xc   :  { %p334_p6 = por %p333_p5, %p332_p4 }
   0xe   :  { %p335_p7 = pnand %p334_p6, %p328_p3 }
  0x10   :  { %338 = shalt.err (!%p335_p7)
}
  0x11   :  { %s390_s28 = smov 128   ;;  %s391_s29 = smov 8  }
  0x12   :  { %24 = dma.hbm_to_vmem [thread:$0]  %s494_s0, 512, %s19_s19, [#allocation3], %s390_s28, %s390_s28, %s391_s29  }
  0x13   :  { %s392_s7 = smov [#allocation5]   ;;  %s339_s11 = scalar_lea.hbm %s497_s3, 512 }
  0x14   :  { %s34_s8 = sshll.u32 %s392_s7, 4  ;;  %p340_p8 = scmp.ne.s32.totalorder %s497_s3, %s339_s11  ;;  %s35_s8 = int_to_ptr.vmem [resolvable:$true] %s34_s8 }
  0x15   :  { %p343_p9 = scmp.lt.u32.totalorder %s339_s11, %s497_s3 }
  0x17   :  { %p345_p10 = pnand %p343_p9, %p340_p8 }
  0x19   :  { %348 = shalt.err (!%p345_p10)
}
  0x1a   :  { %s349_s16 = scalar_lea.vmem %s35_s8, 512  ;;  %p354_p12 = scmp.lt.s32.totalorder %s35_s8, %s35_s8 }
  0x1b   :  { %p350_p11 = scmp.ne.s32.totalorder %s35_s8, %s349_s16  ;;  %p355_p13 = scmp.lt.s32.totalorder %s349_s16, %s349_s16 }
  0x1d   :  { %p356_p0 = por %p355_p13, %p354_p12 }
  0x1f   :  { %p357_p1 = pnand %p356_p0, %p350_p11 }
  0x21   :  { %360 = shalt.err (!%p357_p1)
}
  0x22   :  { %40 = dma.hbm_to_vmem [thread:$0]  %s497_s3, 512, %s35_s8, [#allocation6], %s390_s28, %s390_s28, %s391_s29  }
  0x23   :  { %383 = dma.done.wait [#allocation3], 512  }
  0x24   :  { %384 = vsyncadd [#allocation3], 4294966784 }
  0x25   :  { %385 = dma.done.wait [#allocation6], 512  }
  0x26   :  { %386 = vsyncadd [#allocation6], 4294966784  ;;  %vm53_vm0 = vcmask 261120   ;;  %v49_v0 = vld [vmem:[#allocation2] sm:$0xff]  ;;  %v50_v1 = vld [vmem:[#allocation2 + $0x8] sm:$0xff]  ;;  %s393_s21 = smov [#allocation7]  }
  0x27   :  { %v51_v2 = vld [vmem:[#allocation2 + $0x10] sm:$0xff]  ;;  %v54_v3 = vsel %vm53_vm0, %v49_v0, 0.0  ;;  %v57_v4 = vsel %vm53_vm0, %v50_v1, 0.0  ;;  %v52_v5 = vld [vmem:[#allocation2 + $0x18] sm:$0xff]  ;;  %v129_v28 = vld [vmem:[#allocation5] sm:$0xff]  ;;  %s250_s22 = sshll.u32 %s393_s21, 4  ;;  %s251_s22 = int_to_ptr.vmem [resolvable:$true] %s250_s22 }
  0x28   :  { %55 = vadd.xlane.f32.xlu0 %v54_v3  ;;  %58 = vadd.xlane.f32.xlu1 %v57_v4  ;;  %v60_v6 = vsel %vm53_vm0, %v51_v2, 0.0  ;;  %v63_v7 = vsel %vm53_vm0, %v52_v5, 0.0  ;;  %v130_v29 = vld [vmem:[#allocation5 + $0x8] sm:$0xff]  ;;  %v131_v30 = vld [vmem:[#allocation5 + $0x10] sm:$0xff]  ;;  %v132_v32 = vld [vmem:[#allocation5 + $0x18] sm:$0xff]  ;;  %p366_p3 = scmp.lt.s32.totalorder %s251_s22, %s251_s22 }
  0x29   :  { %v292_v31 = vpack.c.bf16 %v130_v29, %v129_v28  ;;  %v296_v33 = vpack.c.bf16 %v132_v32, %v131_v30  ;;  %v263_v47 = vld [vmem:[%s495_s1] ss:$0 sm:$0xff] }
  0x2a   :  { %v264_v49 = vld [vmem:[%s496_s2] ss:$0 sm:$0xff] }
  0x2b   :  { %293 = vmatprep.subr.bf16.mxu0 %v292_v31  ;;  %300 = vmatprep.subr.bf16.mxu1 %v292_v31 }
  0x2c   :  { %61 = vadd.xlane.f32.xlu0 %v60_v6  ;;  %64 = vadd.xlane.f32.xlu1 %v63_v7 }
  0x2d   :  { %295 = vmatpush3.bf16.msra.mxu0 %v292_v31  ;;  %302 = vmatpush3.bf16.msra.mxu1 %v292_v31 }
  0x2e   :  { %297 = vmatprep.subr.bf16.mxu0 %v296_v33  ;;  %301 = vmatprep.subr.bf16.mxu1 %v296_v33 }
  0x31   :  { %299 = vmatpush3.bf16.msra.mxu0 %v296_v33  ;;  %303 = vmatpush3.bf16.msra.mxu1 %v296_v33 }
  0xb5   :  { %v56_v8 = vpop.xlane.xlu0 %55  ;;  %v59_v9 = vpop.xlane.xlu1 %58 }
  0xb6   :  { %v67_v10 = vmul.f32 0.03125, %v56_v8  ;;  %v68_v11 = vmul.f32 0.03125, %v59_v9 }
  0xb8   :  { %v71_v12 = vsub.f32 %v49_v0, %v67_v10  ;;  %v72_v13 = vsub.f32 %v50_v1, %v68_v11  ;;  %v265_v0 = vld [vmem:[%s498_s4] ss:$0 sm:$0xff]  ;;  %s361_s4 = scalar_lea.vmem %s251_s22, 512 }
  0xb9   :  { %v62_v14 = vpop.xlane.xlu0 %61  ;;  %v65_v15 = vpop.xlane.xlu1 %64  ;;  %p362_p2 = scmp.ne.s32.totalorder %s251_s22, %s361_s4  ;;  %p367_p4 = scmp.lt.s32.totalorder %s361_s4, %s361_s4 }
  0xba   :  { %v69_v16 = vmul.f32 0.03125, %v62_v14  ;;  %v70_v17 = vmul.f32 0.03125, %v65_v15  ;;  %v75_v18 = vmul.f32 %v71_v12, %v71_v12  ;;  %v76_v19 = vmul.f32 %v72_v13, %v72_v13 }
  0xbb   :  { %p368_p5 = por %p367_p4, %p366_p3 }
  0xbc   :  { %v73_v20 = vsub.f32 %v51_v2, %v69_v16  ;;  %v74_v21 = vsub.f32 %v52_v5, %v70_v17  ;;  %v79_v22 = vsel %vm53_vm0, %v75_v18, 0.0  ;;  %v82_v23 = vsel %vm53_vm0, %v76_v19, 0.0 }
  0xbd   :  { %80 = vadd.xlane.f32.xlu0 %v79_v22  ;;  %p369_p6 = pnand %p368_p5, %p362_p2 }
  0xbe   :  { %v77_v24 = vmul.f32 %v73_v20, %v73_v20  ;;  %v78_v25 = vmul.f32 %v74_v21, %v74_v21 }
  0xc0   :  { %v85_v26 = vsel %vm53_vm0, %v77_v24, 0.0  ;;  %v88_v27 = vsel %vm53_vm0, %v78_v25, 0.0 }
  0xc1   :  { %83 = vadd.xlane.f32.xlu0 %v82_v23  ;;  %86 = vadd.xlane.f32.xlu1 %v85_v26 }
  0xc5   :  { %89 = vadd.xlane.f32.xlu1 %v88_v27 }
 0x14a   :  { %v81_v34 = vpop.xlane.xlu0 %80 }
 0x14b   :  { %v91_v35 = vmul.f32 0.03125, %v81_v34 }
 0x14d   :  { %v95_v36 = vadd.f32 1e-05, %v91_v35 }
 0x14e   :  { %v87_v37 = vpop.xlane.xlu1 %86  ;;  %v84_v38 = vpop.xlane.xlu0 %83 }
 0x14f   :  { %309 = vrsqrt.f32 %v95_v36  ;;  %v93_v39 = vmul.f32 0.03125, %v87_v37  ;;  %v92_v40 = vmul.f32 0.03125, %v84_v38 }
 0x151   :  { %v97_v41 = vadd.f32 1e-05, %v93_v39  ;;  %v96_v42 = vadd.f32 1e-05, %v92_v40 }
 0x152   :  { %v90_v43 = vpop.xlane.xlu1 %89 }
 0x153   :  { %311 = vrsqrt.f32 %v97_v41  ;;  %v94_v44 = vmul.f32 0.03125, %v90_v43 }
 0x154   :  { %313 = vrsqrt.f32 %v96_v42 }
 0x155   :  { %v98_v45 = vadd.f32 1e-05, %v94_v44 }
 0x157   :  { %315 = vrsqrt.f32 %v98_v45 }
 0x159   :  { %v310_v46 = vpop.eup %309 }
 0x15a   :  { %v103_v48 = vmul.f32 %v310_v46, %v71_v12 }
 0x15c   :  { %v114_v50 = vmul.f32 %v263_v47, %v103_v48 }
 0x15d   :  { %v312_v51 = vpop.eup %311 }
 0x15e   :  { %v314_v52 = vpop.eup %313  ;;  %v125_v53 = vadd.f32 %v264_v49, %v114_v50  ;;  %v105_v54 = vmul.f32 %v312_v51, %v73_v20 }
 0x15f   :  { %v104_v55 = vmul.f32 %v314_v52, %v72_v13 }
 0x160   :  { %286 = vmatprep.mubr.msk.f32.mxu0 %vm53_vm0, %v125_v53  ;;  %v116_v56 = vmul.f32 %v263_v47, %v105_v54 }
 0x161   :  { %v316_v57 = vpop.eup %315  ;;  %v115_v58 = vmul.f32 %v263_v47, %v104_v55 }
 0x162   :  { %v127_v59 = vadd.f32 %v264_v49, %v116_v56  ;;  %v106_v60 = vmul.f32 %v316_v57, %v74_v21 }
 0x163   :  { %v126_v61 = vadd.f32 %v264_v49, %v115_v58 }
 0x164   :  { %289 = vmatprep.mubr.msk.f32.mxu1 %vm53_vm0, %v127_v59  ;;  %v117_v62 = vmul.f32 %v263_v47, %v106_v60 }
 0x165   :  { %287 = vmatmul.mubr.msk.f32.vlgmr.msra.gmra.mrb[0].mxu0 %vm53_vm0, %v126_v61 }
 0x166   :  { %v128_v63 = vadd.f32 %v264_v49, %v117_v62 }
 0x168   :  { %290 = vmatmul.mubr.msk.f32.vlgmr.msra.gmra.mrb[0].mxu1 %vm53_vm0, %v128_v63 }
 0x238   :  { %v288_v1 = vpop.f32.mrb[0].mxu0 }
 0x239   :  { %v224_v2 = vadd.f32 %v288_v1, %v265_v0  ;;  %v218_v3 = vpop.f32.mrb[1].mxu0 }
 0x23a   :  { %v219_v4 = vadd.f32 %v265_v0, %v218_v3 }
 0x23b   :  { %v238_v5 = vadd.f32 %v224_v2, %v126_v61  ;;  %v291_v6 = vpop.f32.mrb[0].mxu1 }
 0x23c   :  { %v237_v7 = vadd.f32 %v219_v4, %v125_v53  ;;  %v234_v8 = vadd.f32 %v291_v6, %v265_v0  ;;  %v228_v9 = vpop.f32.mrb[1].mxu1 }
 0x23d   :  { %242 = vst.msk [vmem:[#allocation7 + $0x8] sm:$0xff] %vm53_vm0, %v238_v5  ;;  %v229_v10 = vadd.f32 %v265_v0, %v228_v9 }
 0x23e   :  { %241 = vst.msk [vmem:[#allocation7] sm:$0xff] %vm53_vm0, %v237_v7  ;;  %v240_v11 = vadd.f32 %v234_v8, %v128_v63 }
 0x23f   :  { %v239_v12 = vadd.f32 %v229_v10, %v127_v59 }
 0x240   :  { %244 = vst.msk [vmem:[#allocation7 + $0x18] sm:$0xff] %vm53_vm0, %v240_v11 }
 0x241   :  { %243 = vst.msk [vmem:[#allocation7 + $0x10] sm:$0xff] %vm53_vm0, %v239_v12 }
 0x242   :  { %372 = shalt.err (!%p369_p6)
}
 0x243   :  { %s373_s25 = scalar_lea.hbm %s499_s5, 512 }
 0x244   :  { %p374_p7 = scmp.ne.s32.totalorder %s499_s5, %s373_s25  ;;  %p377_p8 = scmp.lt.u32.totalorder %s373_s25, %s499_s5 }
 0x246   :  { %p379_p9 = pnand %p377_p8, %p374_p7 }
 0x248   :  { %382 = shalt.err (!%p379_p9)
}
 0x249   :  { %256 = dma.vmem_to_hbm [thread:$0]  %s251_s22, 512, %s499_s5, [#allocation4], %s390_s28, %s390_s28, %s391_s29  }
 0x24a   :  { %387 = dma.done.wait [#allocation4], 512  }
 0x24b   :  { %388 = vsyncadd [#allocation4], 4294966784 }
 0x24c   :  { %260 = vsyncpa [#allocation3], 1 }
 0x24d   :  { %261 = vsyncpa [#allocation6], 1 }
 0x24e   :  { %262 = vsyncpa [#allocation4], 1 }

// kernel: tpu_custom_call.1
= control target key start
LH: loop header
LB: loop body
LE: loop exit
PB: predicated region body
PF: predicated region fallthrough
CT: control target
= control target key end

     0   :  { %10 = vsyncpa [#allocation3], 0  ;;  %s494_s0 = inlined_call_operand.hbm [shape: f32[32,32], index: 0, kind: input, shape index: {}]   ;;  %s495_s1 = inlined_call_operand.vmem [shape: f32[1,32], index: 1, kind: input, shape index: {}]   ;;  %s496_s2 = inlined_call_operand.vmem [shape: f32[1,32], index: 2, kind: input, shape index: {}]   ;;  %s497_s3 = inlined_call_operand.hbm [shape: f32[32,32], index: 3, kind: input, shape index: {}]   ;;  %s498_s4 = inlined_call_operand.vmem [shape: f32[1,32], index: 4, kind: input, shape index: {}]   ;;  %s499_s5 = inlined_call_operand.hbm [shape: f32[32,32], index: 5, kind: output, shape index: {}]  }
   0x1   :  { %11 = vsyncpa [#allocation6], 0 }
   0x2   :  { %12 = vsyncpa [#allocation4], 0  ;;  %s389_s18 = smov [#allocation2]   ;;  %s317_s22 = scalar_lea.hbm %s494_s0, 512 }
   0x3   :  { %s18_s19 = sshll.u32 %s389_s18, 4  ;;  %p318_p0 = scmp.ne.s32.totalorder %s494_s0, %s317_s22  ;;  %s19_s19 = int_to_ptr.vmem [resolvable:$true] %s18_s19 }
   0x4   :  { %p321_p1 = scmp.lt.u32.totalorder %s317_s22, %s494_s0 }
   0x6   :  { %p323_p2 = pnand %p321_p1, %p318_p0 }
   0x8   :  { %326 = shalt.err (!%p323_p2)
}
   0x9   :  { %s327_s27 = scalar_lea.vmem %s19_s19, 512  ;;  %p332_p4 = scmp.lt.s32.totalorder %s19_s19, %s19_s19 }
   0xa   :  { %p328_p3 = scmp.ne.s32.totalorder %s19_s19, %s327_s27  ;;  %p333_p5 = scmp.lt.s32.totalorder %s327_s27, %s327_s27 }
   0xc   :  { %p334_p6 = por %p333_p5, %p332_p4 }
   0xe   :  { %p335_p7 = pnand %p334_p6, %p328_p3 }
  0x10   :  { %338 = shalt.err (!%p335_p7)
}
  0x11   :  { %s390_s28 = smov 128   ;;  %s391_s29 = smov 8  }
  0x12   :  { %24 = dma.hbm_to_vmem [thread:$0]  %s494_s0, 512, %s19_s19, [#allocation3], %s390_s28, %s390_s28, %s391_s29  }
  0x13   :  { %s392_s7 = smov [#allocation5]   ;;  %s339_s11 = scalar_lea.hbm %s497_s3, 512 }
  0x14   :  { %s34_s8 = sshll.u32 %s392_s7, 4  ;;  %p340_p8 = scmp.ne.s32.totalorder %s497_s3, %s339_s11  ;;  %s35_s8 = int_to_ptr.vmem [resolvable:$true] %s34_s8 }
  0x15   :  { %p343_p9 = scmp.lt.u32.totalorder %s339_s11, %s497_s3 }
  0x17   :  { %p345_p10 = pnand %p343_p9, %p340_p8 }
  0x19   :  { %348 = shalt.err (!%p345_p10)
}
  0x1a   :  { %s349_s16 = scalar_lea.vmem %s35_s8, 512  ;;  %p354_p12 = scmp.lt.s32.totalorder %s35_s8, %s35_s8 }
  0x1b   :  { %p350_p11 = scmp.ne.s32.totalorder %s35_s8, %s349_s16  ;;  %p355_p13 = scmp.lt.s32.totalorder %s349_s16, %s349_s16 }
  0x1d   :  { %p356_p0 = por %p355_p13, %p354_p12 }
  0x1f   :  { %p357_p1 = pnand %p356_p0, %p350_p11 }
  0x21   :  { %360 = shalt.err (!%p357_p1)
}
  0x22   :  { %40 = dma.hbm_to_vmem [thread:$0]  %s497_s3, 512, %s35_s8, [#allocation6], %s390_s28, %s390_s28, %s391_s29  }
  0x23   :  { %383 = dma.done.wait [#allocation3], 512  }
  0x24   :  { %384 = vsyncadd [#allocation3], 4294966784 }
  0x25   :  { %385 = dma.done.wait [#allocation6], 512  }
  0x26   :  { %386 = vsyncadd [#allocation6], 4294966784  ;;  %vm53_vm0 = vcmask 261120   ;;  %v49_v0 = vld [vmem:[#allocation2] sm:$0xff]  ;;  %v50_v1 = vld [vmem:[#allocation2 + $0x8] sm:$0xff]  ;;  %s393_s21 = smov [#allocation7]  }
  0x27   :  { %v51_v2 = vld [vmem:[#allocation2 + $0x10] sm:$0xff]  ;;  %v54_v3 = vsel %vm53_vm0, %v49_v0, 0.0  ;;  %v57_v4 = vsel %vm53_vm0, %v50_v1, 0.0  ;;  %v52_v5 = vld [vmem:[#allocation2 + $0x18] sm:$0xff]  ;;  %v129_v28 = vld [vmem:[#allocation5] sm:$0xff]  ;;  %s250_s22 = sshll.u32 %s393_s21, 4  ;;  %s251_s22 = int_to_ptr.vmem [resolvable:$true] %s250_s22 }
  0x28   :  { %55 = vadd.xlane.f32.xlu0 %v54_v3  ;;  %58 = vadd.xlane.f32.xlu1 %v57_v4  ;;  %v60_v6 = vsel %vm53_vm0, %v51_v2, 0.0  ;;  %v63_v7 = vsel %vm53_vm0, %v52_v5, 0.0  ;;  %v130_v29 = vld [vmem:[#allocation5 + $0x8] sm:$0xff]  ;;  %v131_v30 = vld [vmem:[#allocation5 + $0x10] sm:$0xff]  ;;  %v132_v32 = vld [vmem:[#allocation5 + $0x18] sm:$0xff]  ;;  %p366_p3 = scmp.lt.s32.totalorder %s251_s22, %s251_s22 }
  0x29   :  { %v292_v31 = vpack.c.bf16 %v130_v29, %v129_v28  ;;  %v296_v33 = vpack.c.bf16 %v132_v32, %v131_v30  ;;  %v263_v47 = vld [vmem:[%s495_s1] ss:$0 sm:$0xff] }
  0x2a   :  { %v264_v49 = vld [vmem:[%s496_s2] ss:$0 sm:$0xff] }
  0x2b   :  { %293 = vmatprep.subr.bf16.mxu0 %v292_v31  ;;  %300 = vmatprep.subr.bf16.mxu1 %v292_v31 }
  0x2c   :  { %61 = vadd.xlane.f32.xlu0 %v60_v6  ;;  %64 = vadd.xlane.f32.xlu1 %v63_v7 }
  0x2d   :  { %295 = vmatpush3.bf16.msra.mxu0 %v292_v31  ;;  %302 = vmatpush3.bf16.msra.mxu1 %v292_v31 }
  0x2e   :  { %297 = vmatprep.subr.bf16.mxu0 %v296_v33  ;;  %301 = vmatprep.subr.bf16.mxu1 %v296_v33 }
  0x31   :  { %299 = vmatpush3.bf16.msra.mxu0 %v296_v33  ;;  %303 = vmatpush3.bf16.msra.mxu1 %v296_v33 }
  0xb5   :  { %v56_v8 = vpop.xlane.xlu0 %55  ;;  %v59_v9 = vpop.xlane.xlu1 %58 }
  0xb6   :  { %v67_v10 = vmul.f32 0.03125, %v56_v8  ;;  %v68_v11 = vmul.f32 0.03125, %v59_v9 }
  0xb8   :  { %v71_v12 = vsub.f32 %v49_v0, %v67_v10  ;;  %v72_v13 = vsub.f32 %v50_v1, %v68_v11  ;;  %v265_v0 = vld [vmem:[%s498_s4] ss:$0 sm:$0xff]  ;;  %s361_s4 = scalar_lea.vmem %s251_s22, 512 }
  0xb9   :  { %v62_v14 = vpop.xlane.xlu0 %61  ;;  %v65_v15 = vpop.xlane.xlu1 %64  ;;  %p362_p2 = scmp.ne.s32.totalorder %s251_s22, %s361_s4  ;;  %p367_p4 = scmp.lt.s32.totalorder %s361_s4, %s361_s4 }
  0xba   :  { %v69_v16 = vmul.f32 0.03125, %v62_v14  ;;  %v70_v17 = vmul.f32 0.03125, %v65_v15  ;;  %v75_v18 = vmul.f32 %v71_v12, %v71_v12  ;;  %v76_v19 = vmul.f32 %v72_v13, %v72_v13 }
  0xbb   :  { %p368_p5 = por %p367_p4, %p366_p3 }
  0xbc   :  { %v73_v20 = vsub.f32 %v51_v2, %v69_v16  ;;  %v74_v21 = vsub.f32 %v52_v5, %v70_v17  ;;  %v79_v22 = vsel %vm53_vm0, %v75_v18, 0.0  ;;  %v82_v23 = vsel %vm53_vm0, %v76_v19, 0.0 }
  0xbd   :  { %80 = vadd.xlane.f32.xlu0 %v79_v22  ;;  %p369_p6 = pnand %p368_p5, %p362_p2 }
  0xbe   :  { %v77_v24 = vmul.f32 %v73_v20, %v73_v20  ;;  %v78_v25 = vmul.f32 %v74_v21, %v74_v21 }
  0xc0   :  { %v85_v26 = vsel %vm53_vm0, %v77_v24, 0.0  ;;  %v88_v27 = vsel %vm53_vm0, %v78_v25, 0.0 }
  0xc1   :  { %83 = vadd.xlane.f32.xlu0 %v82_v23  ;;  %86 = vadd.xlane.f32.xlu1 %v85_v26 }
  0xc5   :  { %89 = vadd.xlane.f32.xlu1 %v88_v27 }
 0x14a   :  { %v81_v34 = vpop.xlane.xlu0 %80 }
 0x14b   :  { %v91_v35 = vmul.f32 0.03125, %v81_v34 }
 0x14d   :  { %v95_v36 = vadd.f32 1e-05, %v91_v35 }
 0x14e   :  { %v87_v37 = vpop.xlane.xlu1 %86  ;;  %v84_v38 = vpop.xlane.xlu0 %83 }
 0x14f   :  { %309 = vrsqrt.f32 %v95_v36  ;;  %v93_v39 = vmul.f32 0.03125, %v87_v37  ;;  %v92_v40 = vmul.f32 0.03125, %v84_v38 }
 0x151   :  { %v97_v41 = vadd.f32 1e-05, %v93_v39  ;;  %v96_v42 = vadd.f32 1e-05, %v92_v40 }
 0x152   :  { %v90_v43 = vpop.xlane.xlu1 %89 }
 0x153   :  { %311 = vrsqrt.f32 %v97_v41  ;;  %v94_v44 = vmul.f32 0.03125, %v90_v43 }
 0x154   :  { %313 = vrsqrt.f32 %v96_v42 }
 0x155   :  { %v98_v45 = vadd.f32 1e-05, %v94_v44 }
 0x157   :  { %315 = vrsqrt.f32 %v98_v45 }
 0x159   :  { %v310_v46 = vpop.eup %309 }
 0x15a   :  { %v103_v48 = vmul.f32 %v310_v46, %v71_v12 }
 0x15c   :  { %v114_v50 = vmul.f32 %v263_v47, %v103_v48 }
 0x15d   :  { %v312_v51 = vpop.eup %311 }
 0x15e   :  { %v314_v52 = vpop.eup %313  ;;  %v125_v53 = vadd.f32 %v264_v49, %v114_v50  ;;  %v105_v54 = vmul.f32 %v312_v51, %v73_v20 }
 0x15f   :  { %v104_v55 = vmul.f32 %v314_v52, %v72_v13 }
 0x160   :  { %286 = vmatprep.mubr.msk.f32.mxu0 %vm53_vm0, %v125_v53  ;;  %v116_v56 = vmul.f32 %v263_v47, %v105_v54 }
 0x161   :  { %v316_v57 = vpop.eup %315  ;;  %v115_v58 = vmul.f32 %v263_v47, %v104_v55 }
 0x162   :  { %v127_v59 = vadd.f32 %v264_v49, %v116_v56  ;;  %v106_v60 = vmul.f32 %v316_v57, %v74_v21 }
 0x163   :  { %v126_v61 = vadd.f32 %v264_v49, %v115_v58 }
 0x164   :  { %289 = vmatprep.mubr.msk.f32.mxu1 %vm53_vm0, %v127_v59  ;;  %v117_v62 = vmul.f32 %v263_v47, %v106_v60 }
 0x165   :  { %287 = vmatmul.mubr.msk.f32.vlgmr.msra.gmra.mrb[0].mxu0 %vm53_vm0, %v126_v61 }
 0x166   :  { %v128_v63 = vadd.f32 %v264_v49, %v117_v62 }
 0x168   :  { %290 = vmatmul.mubr.msk.f32.vlgmr.msra.gmra.mrb[0].mxu1 %vm53_vm0, %v128_v63 }
 0x238   :  { %v288_v1 = vpop.f32.mrb[0].mxu0 }
 0x239   :  { %v224_v2 = vadd.f32 %v288_v1, %v265_v0  ;;  %v218_v3 = vpop.f32.mrb[1].mxu0 }
 0x23a   :  { %v219_v4 = vadd.f32 %v265_v0, %v218_v3 }
 0x23b   :  { %v238_v5 = vadd.f32 %v224_v2, %v126_v61  ;;  %v291_v6 = vpop.f32.mrb[0].mxu1 }
 0x23c   :  { %v237_v7 = vadd.f32 %v219_v4, %v125_v53  ;;  %v234_v8 = vadd.f32 %v291_v6, %v265_v0  ;;  %v228_v9 = vpop.f32.mrb[1].mxu1 }
 0x23d   :  { %242 = vst.msk [vmem:[#allocation7 + $0x8] sm:$0xff] %vm53_vm0, %v238_v5  ;;  %v229_v10 = vadd.f32 %v265_v0, %v228_v9 }
 0x23e   :  { %241 = vst.msk [vmem:[#allocation7] sm:$0xff] %vm53_vm0, %v237_v7  ;;  %v240_v11 = vadd.f32 %v234_v8, %v128_v63 }
 0x23f   :  { %v239_v12 = vadd.f32 %v229_v10, %v127_v59 }
 0x240   :  { %244 = vst.msk [vmem:[#allocation7 + $0x18] sm:$0xff] %vm53_vm0, %v240_v11 }
 0x241   :  { %243 = vst.msk [vmem:[#allocation7 + $0x10] sm:$0xff] %vm53_vm0, %v239_v12 }
 0x242   :  { %372 = shalt.err (!%p369_p6)
}
 0x243   :  { %s373_s25 = scalar_lea.hbm %s499_s5, 512 }
 0x244   :  { %p374_p7 = scmp.ne.s32.totalorder %s499_s5, %s373_s25  ;;  %p377_p8 = scmp.lt.u32.totalorder %s373_s25, %s499_s5 }
 0x246   :  { %p379_p9 = pnand %p377_p8, %p374_p7 }
 0x248   :  { %382 = shalt.err (!%p379_p9)
}
 0x249   :  { %256 = dma.vmem_to_hbm [thread:$0]  %s251_s22, 512, %s499_s5, [#allocation4], %s390_s28, %s390_s28, %s391_s29  }
 0x24a   :  { %387 = dma.done.wait [#allocation4], 512  }
 0x24b   :  { %388 = vsyncadd [#allocation4], 4294966784 }
 0x24c   :  { %260 = vsyncpa [#allocation3], 1 }
 0x24d   :  { %261 = vsyncpa [#allocation6], 1 }
 0x24e   :  { %262 = vsyncpa [#allocation4], 1 }

</bundles_post_ra>
